<compile_context>
chip_gen: v7x
topology: tpu7x:2x2x1
jax: 0.10.0
libtpu: 0.0.40
codegen_flags: <defaults>
</compile_context>

<pallas_src>
import jax
import jax.numpy as jnp
from jax.experimental import pallas as pl
from jax.experimental.pallas import tpu as pltpu


def _round_up(x, m):
    return (x + m - 1) // m * m


def _vmem_capacity_bytes():
    # Per-core VMEM capacity; conservative (v7x-sized) fallback if the query
    # is unavailable on this host / build.
    try:
        cap = int(pltpu.get_tpu_info().vmem_capacity_bytes)
        if cap > 0:
            return cap
    except Exception:
        pass
    return 64 << 20


def _patch_embed_kernel(p_ref, w_ref, pos_ref, out_ref):
    # p_ref:   (tm, Kp) bf16  -- patch rows for this (batch, NP-tile)
    # w_ref:   (Kp, Ep) bf16  -- projection weight (constant block index)
    # pos_ref: (tm, Ep) f32   -- (pos_embed + bias) rows for this NP-tile
    # out_ref: (tm, Ep) out dtype
    proj = jnp.dot(p_ref[...], w_ref[...], preferred_element_type=jnp.float32)
    out_ref[...] = (proj + pos_ref[...]).astype(out_ref.dtype)


def patch_embedding(x, weight, bias, pos_embed, patch_size):
    """x: (B, C, H, W) NCHW. weight: (E, C, P, P). bias: (E,). pos_embed: (1, NP, E).

    Returns (B, NP, E), matching PyTorch PatchEmbedding.forward.
    """
    B, C, H, W = x.shape
    P = patch_size
    assert H % P == 0 and W % P == 0, "image size must be divisible by patch size"
    Hp, Wp = H // P, W // P
    NP = Hp * Wp
    E = weight.shape[0]
    K = C * P * P

    out_dtype = x.dtype
    out_isz = jnp.dtype(out_dtype).itemsize

    # Lane-dense contraction / output dims (no-op when already aligned).
    Kp = _round_up(K, 128)
    Ep = _round_up(E, 128)

    # --- M tile sized from the per-generation VMEM budget --------------------
    cap = _vmem_capacity_bytes()
    budget = int(min(96 << 20, (cap * 3) // 4))      # scoped-VMEM limit we set
    work_budget = budget // 2                        # headroom vs compiler scratch
    fixed = 2 * Kp * Ep * 2                          # double-buffered bf16 weight
    per_row = 2 * (Kp * 2 + Ep * 4 + Ep * out_isz)   # double-buffered row streams
    tm = int(max((work_budget - fixed) // per_row, 8))
    tm = min(tm, 1024)
    tm = max(8, (tm // 8) * 8)
    tm = min(tm, _round_up(NP, 8))   # never duplicate pos rows inside a tile
    if tm >= 256:
        tm = (tm // 256) * 256       # 256-aligned M for v6e/v7x 256x256 MXU passes

    NPp = _round_up(NP, tm)
    grid_np = NPp // tm
    if B * grid_np < 2 and NP >= 16:
        # Guarantee >= 2 parallel grid steps so both v7x TensorCores get work.
        tm = _round_up(-(-NP // 2), 8)
        NPp = _round_up(NP, tm)
        grid_np = NPp // tm

    vmem_need = 2 * (tm * Kp * 2 + tm * Ep * 4 + tm * Ep * out_isz) + fixed
    vmem_limit = int(min(budget, max(2 * vmem_need, 16 << 20)))

    # --- layout glue (bf16 first: halves bytes moved by the transpose) -------
    # (B, C, Hp, P, Wp, P) -> (B, Hp, Wp, C, P, P) -> (B, NP, K), exactly the
    # ordering Conv2d(kernel=stride=P) contracts over.
    patches = x.astype(jnp.bfloat16)
    patches = patches.reshape(B, C, Hp, P, Wp, P).transpose(0, 2, 4, 1, 3, 5)
    patches = patches.reshape(B, NP, K)
    if (NPp - NP) or (Kp - K):
        patches = jnp.pad(patches, ((0, 0), (0, NPp - NP), (0, Kp - K)))

    # Conv2d weight (E, C, P, P) -> (K, E) bf16.
    w = weight.reshape(E, K).T.astype(jnp.bfloat16)
    if (Kp - K) or (Ep - E):
        w = jnp.pad(w, ((0, Kp - K), (0, Ep - E)))

    # Bias folded into the deduplicated per-patch positional embedding (f32).
    pos_b = pos_embed.reshape(NP, E).astype(jnp.float32) + \
        bias.reshape(1, E).astype(jnp.float32)
    if (NPp - NP) or (Ep - E):
        pos_b = jnp.pad(pos_b, ((0, NPp - NP), (0, Ep - E)))

    out = pl.pallas_call(
        _patch_embed_kernel,
        out_shape=jax.ShapeDtypeStruct((B, NPp, Ep), out_dtype),
        grid_spec=pltpu.PrefetchScalarGridSpec(
            num_scalar_prefetch=0,
            grid=(B, grid_np),
            in_specs=[
                pl.BlockSpec((None, tm, Kp), lambda b, j: (b, j, 0)),
                pl.BlockSpec((Kp, Ep), lambda b, j: (0, 0)),
                pl.BlockSpec((tm, Ep), lambda b, j: (j, 0)),
            ],
            out_specs=pl.BlockSpec((None, tm, Ep), lambda b, j: (b, j, 0)),
        ),
        compiler_params=pltpu.CompilerParams(
            dimension_semantics=("parallel", "parallel"),
            vmem_limit_bytes=vmem_limit,
        ),
    )(patches, w, pos_b)

    if (NPp - NP) or (Ep - E):
        out = out[:, :NP, :E]
    return out


def _reference(x, weight, bias, pos_embed, patch_size):
    # Pure-JAX f32 reference of the PyTorch forward (conv via lax.conv).
    y = jax.lax.conv_general_dilated(
        x, weight,
        window_strides=(patch_size, patch_size),
        padding="VALID",
        dimension_numbers=("NCHW", "OIHW", "NCHW"),
    ) + bias.reshape(1, -1, 1, 1)
    B, E, Hp, Wp = y.shape
    y = y.reshape(B, E, Hp * Wp).transpose(0, 2, 1)
    return y + pos_embed


if __name__ == "__main__":
    # Small shapes consistent with the module: img 16x16, patch 4, C=4, E=32.
    B, C, IMG, P, E = 2, 4, 16, 4, 32
    NP = (IMG // P) ** 2

    key = jax.random.PRNGKey(0)
    kx, kw, kb, kp = jax.random.split(key, 4)
    x = jax.random.normal(kx, (B, C, IMG, IMG), dtype=jnp.float32)
    weight = jax.random.normal(kw, (E, C, P, P), dtype=jnp.float32) * 0.02
    bias = jax.random.normal(kb, (E,), dtype=jnp.float32) * 0.02
    # trunc_normal_(std=0.02) init approximated deterministically with normal*0.02
    pos_embed = jax.random.normal(kp, (1, NP, E), dtype=jnp.float32) * 0.02

    out = patch_embedding(x, weight, bias, pos_embed, P)
    out = jax.block_until_ready(out)

    ref = _reference(x, weight, bias, pos_embed, P)
    assert out.shape == (B, NP, E), out.shape
    # bf16 MXU operands (f32 accumulate): loosen tolerance vs the f32 reference.
    assert jnp.allclose(out, ref, atol=3e-2, rtol=3e-2), float(
        jnp.max(jnp.abs(out - ref)))

    print("KERNEL_OK")
</pallas_src>

<mosaic_0001>
module attributes {stable_mosaic.version = 11 : i64} {
  func.func @_patch_embed_kernel(%arg0: i32, %arg1: i32, %arg2: memref<1x16x128xbf16, #tpu.memory_space<vmem>>, %arg3: memref<128x128xbf16, #tpu.memory_space<vmem>>, %arg4: memref<16x128xf32, #tpu.memory_space<vmem>>, %arg5: memref<1x16x128xf32, #tpu.memory_space<vmem>>) attributes {dimension_semantics = [#tpu.dimension_semantics<parallel>, #tpu.dimension_semantics<parallel>], iteration_bounds = array<i64: 2, 1>, scalar_prefetch = 0 : i64, scratch_operands = 0 : i64, tpu.core_type = #tpu.core_type<tc>, window_params = [{transform_indices = @transform_0, window_bounds = array<i64: 1, 16, 128>}, {pipeline_mode = #tpu.pipeline_mode<synchronous>, transform_indices = @transform_1, window_bounds = array<i64: 128, 128>}, {transform_indices = @transform_2, window_bounds = array<i64: 16, 128>}, {transform_indices = @transform_3, window_bounds = array<i64: 1, 16, 128>}]} {
    %c0 = arith.constant 0 : index
    %c0_0 = arith.constant 0 : index
    %c0_1 = arith.constant 0 : index
    %0 = vector.load %arg2[%c0, %c0_0, %c0_1] : memref<1x16x128xbf16, #tpu.memory_space<vmem>>, vector<1x16x128xbf16>
    %1 = vector.shape_cast %0 : vector<1x16x128xbf16> to vector<16x128xbf16>
    %c0_2 = arith.constant 0 : index
    %c0_3 = arith.constant 0 : index
    %2 = vector.load %arg3[%c0_2, %c0_3] : memref<128x128xbf16, #tpu.memory_space<vmem>>, vector<128x128xbf16>
    %cst = arith.constant dense<0.000000e+00> : vector<16x128xf32>
    %3 = tpu.matmul %1, %2, %cst {dimension_numbers = #tpu.dot_dimension_numbers<[1], [0], [0], [1], [0, 0, 1, 1], [], []>} : vector<16x128xbf16>, vector<128x128xbf16>, vector<16x128xf32> -> vector<16x128xf32>
    %c0_4 = arith.constant 0 : index
    %c0_5 = arith.constant 0 : index
    %4 = vector.load %arg4[%c0_4, %c0_5] : memref<16x128xf32, #tpu.memory_space<vmem>>, vector<16x128xf32>
    %5 = arith.addf %3, %4 : vector<16x128xf32>
    %c0_6 = arith.constant 0 : index
    %c0_7 = arith.constant 0 : index
    %c0_8 = arith.constant 0 : index
    %6 = vector.load %arg5[%c0_6, %c0_7, %c0_8] : memref<1x16x128xf32, #tpu.memory_space<vmem>>, vector<1x16x128xf32>
    %7 = vector.shape_cast %6 : vector<1x16x128xf32> to vector<16x128xf32>
    %8 = vector.shape_cast %5 : vector<16x128xf32> to vector<1x16x128xf32>
    tpu.vector_store %arg5[%c0_6, %c0_7, %c0_8], %8 {strides = array<i32>} : memref<1x16x128xf32, #tpu.memory_space<vmem>>, vector<1x16x128xf32>,
    return
  }
  func.func @transform_0(%arg0: i32, %arg1: i32) -> (i32, i32, i32) {
    %c0_i32 = arith.constant 0 : i32
    %c0_i32_0 = arith.constant 0 : i32
    return %arg0, %arg1, %c0_i32 : i32, i32, i32
  }
  func.func @transform_1(%arg0: i32, %arg1: i32) -> (i32, i32) {
    %c0_i32 = arith.constant 0 : i32
    %c0_i32_0 = arith.constant 0 : i32
    %c0_i32_1 = arith.constant 0 : i32
    return %c0_i32, %c0_i32_0 : i32, i32
  }
  func.func @transform_2(%arg0: i32, %arg1: i32) -> (i32, i32) {
    %c0_i32 = arith.constant 0 : i32
    %c0_i32_0 = arith.constant 0 : i32
    return %arg1, %c0_i32 : i32, i32
  }
  func.func @transform_3(%arg0: i32, %arg1: i32) -> (i32, i32, i32) {
    %c0_i32 = arith.constant 0 : i32
    %c0_i32_0 = arith.constant 0 : i32
    return %arg0, %arg1, %c0_i32 : i32, i32, i32
  }
}

</mosaic_0001>

<bundles_post_ra>
// kernel: tpu_custom_call.1
= control target key start
LH: loop header
LB: loop body
LE: loop exit
PB: predicated region body
PF: predicated region fallthrough
CT: control target
= control target key end

     0   :  { %8 = vsyncpa [#allocation3], 0  ;;  %s1119_s0 = inlined_call_operand.hbm [shape: bf16[2,16,128], index: 0, kind: input, shape index: {}]   ;;  %s1120_s1 = inlined_call_operand.hbm [shape: bf16[128,128], index: 1, kind: input, shape index: {}]   ;;  %s1121_s2 = inlined_call_operand.hbm [shape: f32[16,128], index: 2, kind: input, shape index: {}]   ;;  %s1122_s3 = inlined_call_operand.hbm [shape: f32[2,16,128], index: 3, kind: output, shape index: {}]  }
   0x1   :  { %10 = vsyncpa [#allocation3 + $0x1], 0 }
   0x2   :  { %11 = vsyncpa [#allocation6], 0 }
   0x3   :  { %12 = vsyncpa [#allocation4], 0 }
   0x4   :  { %14 = vsyncpa [#allocation4 + $0x1], 0  ;;  %s854_s12 = smov 0   ;;  %s856_s13 = smov 0  }
   0x5   :  { %s858_s14 = smov 0   ;;  %s860_s15 = smov 0  }
   0x6   :  { %s862_s16 = smov 0   ;;  %s864_s17 = smov 0  }
   0x7 LB: > { %s489_s18 = sadd.s32 4294967295, %s820_s17   ;;  %s490_s19 = sadd.s32 4294967294, %s820_s17   ;;  %s820_s17 = sphi %s864_s17, %s20_s17   ;;  %s816_s16 = sphi %s862_s16, %s1144_s16   ;;  %s812_s15 = sphi %s860_s15, %s1143_s15   ;;  %s808_s14 = sphi %s858_s14, %s1142_s14   ;;  %s804_s13 = sphi %s856_s13, %s1141_s13   ;;  %s800_s12 = sphi %s854_s12, %s1140_s12  }
   0x8   : > { %p54_p0 = scmp.ne.s32.totalorder %s804_s13, %s800_s12  ;;  %p888_p1 = scmp.eq.s32.totalorder %s489_s18, 0 }
   0x9   : > { %p892_p2 = scmp.eq.s32.totalorder %s489_s18, 1  ;;  %p133_p3 = scmp.eq.s32.totalorder %s490_s19, 1 }
   0xa   : > { %s1127_s20 = scalar_select %p888_p1, 1, 0 }
   0xb   : > { %p898_p4 = por %p888_p1, %p54_p0  ;;  %p491_p5 = scmp.ge.s32.totalorder %s820_s17, 1 }
   0xc   : > { %p903_p6 = por %p133_p3, %p54_p0  ;;  %p140_p7 = scmp.lt.s32.totalorder %s820_s17, 3 }
   0xd   : > { %s1129_s22 = scalar_select %p898_p4, 1, 0 }
   0xe   : > { %s1130_s23 = scalar_select %p903_p6, 1, 0 }
   0xf   : > { %p908_p8 = pnand %p491_p5, %p140_p7  ;;  %s822_s25 = smov [#allocation5]  }
  0x10   : > { %s152_s26 = sshll.u32 %s822_s25, 4  ;;  %s823_s28 = smov [#allocation7]   ;;  %s912_s26 = int_to_ptr.vmem [resolvable:$true] %s152_s26 }
  0x11   : > { %p560_p9 = pneg %p908_p8  ;;  %s168_s29 = sshll.u32 %s823_s28, 4  ;;  %s923_s29 = int_to_ptr.vmem [resolvable:$true] %s168_s29 }
  0x12   : > { %s648_s5 = scalar_lea.hbm %s1120_s1, 1024 }
  0x13   : > { %p919_p11 = pnand %p560_p9, %p888_p1  ;;  %p649_p12 = scmp.ne.s32.totalorder %s1120_s1, %s648_s5 }
  0x14   : > { %p655_p5 = scmp.lt.u32.totalorder %s648_s5, %s1120_s1 }
  0x15   : > { %p650_p13 = pneg %p919_p11 }
  0x17   : > { %p651_p0 = pnand %p650_p13, %p649_p12 }
  0x19   : > { %p652_p3 = pneg %p651_p0 }
  0x1b   : > { %p657_p7 = pnand %p655_p5, %p652_p3 }
  0x1d   : > { %660 = shalt.err (!%p657_p7)
}
  0x1e   : > { %s661_s10 = scalar_lea.vmem %s912_s26, 1024  ;;  %p669_p1 = scmp.lt.s32.totalorder %s912_s26, %s912_s26 }
  0x1f   : > { %p662_p9 = scmp.ne.s32.totalorder %s912_s26, %s661_s10  ;;  %p670_p12 = scmp.lt.s32.totalorder %s661_s10, %s661_s10 }
  0x21   : > { %p664_p10 = pnand %p662_p9, %p650_p13  ;;  %p671_p0 = por %p670_p12, %p669_p1 }
  0x23   : > { %p665_p6 = pneg %p664_p10 }
  0x25   : > { %p672_p4 = pnand %p671_p0, %p665_p6 }
  0x27   : > { %675 = shalt.err (!%p672_p4)
}
  0x28   : > { %s824_s11 = smov 64   ;;  %s825_s18 = smov 4  }
  0x29   : > { %563 = dma.hbm_to_vmem [thread:$0]  (!%p919_p11), %s1120_s1, 1024, %s912_s26, [#allocation6], %s824_s11, %s824_s11, %s825_s18  }
  0x2a   : > { %s676_s4 = scalar_lea.hbm %s1121_s2, 256 }
  0x2b   : > { %p677_p1 = scmp.ne.s32.totalorder %s1121_s2, %s676_s4  ;;  %p683_p10 = scmp.lt.u32.totalorder %s676_s4, %s1121_s2 }
  0x2d   : > { %p679_p4 = pnand %p677_p1, %p650_p13 }
  0x2f   : > { %p680_p6 = pneg %p679_p4 }
  0x31   : > { %p685_p3 = pnand %p683_p10, %p680_p6 }
  0x33   : > { %688 = shalt.err (!%p685_p3)
}
  0x34   : > { %s689_s26 = scalar_lea.vmem %s923_s29, 256  ;;  %p697_p12 = scmp.lt.s32.totalorder %s923_s29, %s923_s29 }
  0x35   : > { %p690_p5 = scmp.ne.s32.totalorder %s923_s29, %s689_s26  ;;  %p698_p0 = scmp.lt.s32.totalorder %s689_s26, %s689_s26 }
  0x37   : > { %p692_p7 = pnand %p690_p5, %p650_p13  ;;  %p699_p1 = por %p698_p0, %p697_p12 }
  0x39   : > { %p693_p9 = pneg %p692_p7 }
  0x3b   : > { %p700_p4 = pnand %p699_p1, %p693_p9 }
  0x3d   : > { %703 = shalt.err (!%p700_p4)
}
  0x3e   : > { %s826_s9 = smov 128   ;;  %s827_s10 = smov 8  }
  0x3f   : > { %566 = dma.hbm_to_vmem [thread:$0]  (!%p919_p11), %s1121_s2, 256, %s923_s29, [#allocation6], %s826_s9, %s826_s9, %s827_s10  }
  0x40   : > { %s32_s28 = sadd.s32 1, %s816_s16  ;;  %s41_s30 = sadd.s32 1, %s808_s14 }
  0x41   : > { %p34_p13 = scmp.ge.s32.totalorder %s32_s28, 2  ;;  %p48_p6 = scmp.ne.s32.totalorder %s808_s14, %s804_s13 }
  0x42   : > { %p49_p10 = scmp.eq.s32.totalorder %s820_s17, 0  ;;  %p577_p3 = scmp.lt.s32.totalorder %s820_s17, 2 }
  0x43   : > { %s1146_s28 = smov (%p34_p13, %s32_s28), 0  ;;  %p990_p7 = por %p892_p2, %p48_p6 }
  0x44   : > { %p50_p5 = por %p49_p10, %p48_p6  ;;  %s36_s27 = ssub.s32 %s816_s16, %s1146_s28 }
  0x45   : > { %s1133_s4 = scalar_select %p990_p7, 1, 0 }
  0x46   : > { %s182_s5 = sand.u32 1, %s808_s14   ;;  %p39_p9 = scmp.eq.s32.totalorder %s36_s27, 0 }
  0x47   : > { %s495_s29 = sshll.u32 %s182_s5, 3  ;;  %s517_s6 = sshll.u32 %s816_s16, 7 }
  0x48   : > { %s999_s7 = scalar_select %p39_p9, %s808_s14, %s41_s30  }
  0x49   : > { %s1004_s9 = scalar_lea.hbm %s1119_s0, %s517_s6  ;;  %s186_s21 = scalar_lea.vmem [#allocation2], %s495_s29 }
  0x4a   : > { %s195_s10 = sshll.u32 %s186_s21, 4  ;;  %p1008_p2 = pnand %p577_p3, %p50_p5  ;;  %s1012_s10 = int_to_ptr.vmem [resolvable:$true] %s195_s10 }
  0x4b   : > { %s1014_s25 = scalar_lea.sflag [#allocation3], %s182_s5  ;;  %s704_s30 = scalar_lea.hbm %s1004_s9, 128 }
  0x4c   : > { %p705_p11 = scmp.ne.s32.totalorder %s1004_s9, %s704_s30  ;;  %p706_p12 = pneg %p1008_p2 }
  0x4d   : > { %s709_s6 = scalar_lea.hbm %s1119_s0, 256  ;;  %p710_p4 = scmp.lt.u32.totalorder %s1004_s9, %s1119_s0 }
  0x4e   : > { %p707_p0 = pnand %p706_p12, %p705_p11  ;;  %p711_p13 = scmp.lt.u32.totalorder %s709_s6, %s704_s30 }
  0x4f   : > { %p713_p10 = scmp.lt.u32.totalorder %s704_s30, %s1004_s9 }
  0x50   : > { %p708_p1 = pneg %p707_p0  ;;  %p712_p6 = por %p711_p13, %p710_p4 }
  0x52   : > { %p714_p3 = por %p713_p10, %p712_p6 }
  0x54   : > { %p715_p5 = pnand %p714_p3, %p708_p1 }
  0x56   : > { %718 = shalt.err (!%p715_p5)
}
  0x57   : > { %s719_s5 = scalar_lea.vmem %s1012_s10, 128  ;;  %s828_s21 = smov [#allocation2]  }
  0x58   : > { %p720_p9 = scmp.ne.s32.totalorder %s1012_s10, %s719_s5  ;;  %s724_s27 = sshll.u32 %s828_s21, 4  ;;  %s725_s27 = int_to_ptr.vmem [resolvable:$false] %s724_s27 }
  0x59   : > { %s726_s29 = scalar_lea.vmem %s725_s27, 256  ;;  %p727_p7 = scmp.lt.s32.totalorder %s1012_s10, %s725_s27 }
  0x5a   : > { %p722_p11 = pnand %p720_p9, %p706_p12  ;;  %p728_p4 = scmp.lt.s32.totalorder %s726_s29, %s719_s5 }
  0x5c   : > { %p723_p0 = pneg %p722_p11  ;;  %p729_p13 = por %p728_p4, %p727_p7 }
  0x5e   : > { %p730_p6 = pnand %p729_p13, %p723_p0 }
  0x60   : > { %733 = shalt.err (!%p730_p6)
}
  0x61   : > { %570 = dma.hbm_to_vmem [thread:$0]  (!%p1008_p2), %s1004_s9, 128, %s1012_s10, %s1014_s25, %s824_s11, %s824_s11, %s825_s18  }
  0x62   : > { %207 = sbr.rel (%p908_p8) target bundleno = 373 (0x175), region = 32  ;;  %s1048_s30 = sand.u32 (!%p908_p8), 1, %s804_s13  }
  0x63   : > { %s499_s6 = sshll.u32 (!%p908_p8), %s1048_s30, 3  ;;  %s210_s8 = scalar_lea.sflag (!%p908_p8), [#allocation3], %s1048_s30 }
  0x64   : > { %s1052_s26 = scalar_lea.vmem (!%p908_p8), [#allocation2], %s499_s6  ;;  %p1135_p7 = scmp.ne.s32.totalorder (!%p908_p8), %s1129_s22, 0 }
  0x69   : > { %787 = dma.done.wait (%p1135_p7), %s210_s8, 128  }
  0x6a   : > { %789 = vsyncadd (%p1135_p7), %s210_s8, 4294967168  ;;  %p1136_p2 = scmp.ne.s32.totalorder %s1127_s20, 0 }
  0x6c   : > { %791 = dma.done.wait (%p1136_p2), [#allocation6], 1280  }
  0x6d   : > { %793 = vsyncadd (%p1136_p2), [#allocation6], 4294966016  ;;  %v829_v0 = vmov 0.0   ;;  %vm830_vm0 = vmmov 0   ;;  %v639_v1 = vld [vmem:[#allocation5] sm:$0xff]   ;;  %v640_v2 = vld [vmem:[#allocation5 + $0x8] sm:$0xff]  }
  0x6e   : > { %528 = vmatprep.subr.bf16.mxu0 %v829_v0  ;;  %544 = vmatprep.mubr.msk.bf16.mxu0 %vm830_vm0, %v829_v0  ;;  %v641_v3 = vld [vmem:[#allocation5 + $0x10] sm:$0xff]   ;;  %v642_v4 = vld [vmem:[#allocation5 + $0x18] sm:$0xff]   ;;  %v643_v5 = vld [vmem:[#allocation5 + $0x20] sm:$0xff]   ;;  %s502_s20 = sshll.u32 %s1048_s30, 4  ;;  %s518_s11 = sshll.u32 %s812_s15, 8 }
  0x6f   : > { %529 = vmatpush3.bf16.msra.mxu0 %v639_v1  ;;  %v644_v6 = vld [vmem:[#allocation5 + $0x28] sm:$0xff]   ;;  %v645_v7 = vld [vmem:[#allocation5 + $0x30] sm:$0xff]   ;;  %v646_v8 = vld [vmem:[#allocation5 + $0x38] sm:$0xff]   ;;  %s243_s22 = scalar_lea.vmem [#allocation8], %s502_s20  ;;  %s1070_s10 = scalar_lea.hbm %s1122_s3, %s518_s11 }
  0x70   : > { %530 = vmatprep.subr.bf16.mxu0 %v829_v0  ;;  %v647_v9 = vld [vmem:[%s1052_s26] sm:$0xff]   ;;  %v266_v10 = vld [vmem:[#allocation7] sm:$0xff]  ;;  %s381_s24 = sshll.u32 %s243_s22, 4  ;;  %v267_v12 = vld [vmem:[#allocation7 + $0x8] sm:$0xff]  ;;  %s366_s15 = scalar_lea.sflag [#allocation4], %s1048_s30  ;;  %s1065_s24 = int_to_ptr.vmem [resolvable:$true] %s381_s24 }
  0x71   : > { %s734_s19 = scalar_lea.vmem %s1065_s24, 256  ;;  %p1137_p12 = scmp.ne.s32.totalorder %s1133_s4, 0 }
  0x72   : > { %p735_p8 = scmp.ne.s32.totalorder %s1065_s24, %s734_s19  ;;  %s831_s25 = smov [#allocation8]  }
  0x73   : > { %531 = vmatpush3.bf16.msra.mxu0 %v640_v2  ;;  %s738_s5 = sshll.u32 %s831_s25, 4  ;;  %s739_s5 = int_to_ptr.vmem [resolvable:$false] %s738_s5 }
  0x74   : > { %532 = vmatprep.subr.bf16.mxu0 %v829_v0  ;;  %p736_p1 = pnand %p735_p8, %p1137_p12  ;;  %s740_s21 = scalar_lea.vmem %s739_s5, 512 }
  0x75   : > { %p741_p3 = scmp.lt.s32.totalorder %s1065_s24, %s739_s5  ;;  %p742_p5 = scmp.lt.s32.totalorder %s740_s21, %s734_s19 }
  0x76   : > { %p737_p10 = pneg %p736_p1 }
  0x77   : > { %533 = vmatpush3.bf16.msra.mxu0 %v641_v3  ;;  %p743_p9 = por %p742_p5, %p741_p3 }
  0x78   : > { %534 = vmatprep.subr.bf16.mxu0 %v829_v0 }
  0x79   : > { %p744_p11 = pnand %p743_p9, %p737_p10 }
  0x7b   : > { %535 = vmatpush3.bf16.msra.mxu0 %v642_v4 }
  0x7c   : > { %536 = vmatprep.subr.bf16.mxu0 %v829_v0 }
  0x7f   : > { %537 = vmatpush3.bf16.msra.mxu0 %v643_v5 }
  0x80   : > { %538 = vmatprep.subr.bf16.mxu0 %v829_v0 }
  0x83   : > { %539 = vmatpush3.bf16.msra.mxu0 %v644_v6 }
  0x84   : > { %540 = vmatprep.subr.bf16.mxu0 %v829_v0 }
  0x87   : > { %541 = vmatpush3.bf16.msra.mxu0 %v645_v7 }
  0x88   : > { %542 = vmatprep.subr.bf16.mxu0 %v829_v0 }
  0x8b   : > { %543 = vmatpush3.bf16.msra.mxu0 %v646_v8 }
  0x8e   : > { %545 = vmatmul.mubr.bf16.vlgmr.msra.gmra.mrb[0].mxu0 %v647_v9 }
 0x161   : > { %v356_v11 = vpop.f32.mrb[0].mxu0 }
 0x162   : > { %v357_v13 = vadd.f32 %v356_v11, %v266_v10  ;;  %v546_v14 = vpop.f32.mrb[1].mxu0 }
 0x163   : > { %v359_v15 = vpop.f32.mrb[2].mxu0 }
 0x164   : > { %363 = vst [vmem:[%s243_s22] sm:$0xff] %v357_v13  ;;  %v360_v16 = vadd.f32 %v359_v15, %v267_v12  ;;  %v547_v17 = vpop.f32.mrb[3].mxu0 }
 0x166   : > { %364 = vst [vmem:[%s243_s22 + $0x8] sm:$0xff] %v360_v16 }
 0x167   : > { %747 = shalt.err (!%p744_p11)
}
 0x168   : > { %s748_s27 = scalar_lea.hbm %s1070_s10, 256  ;;  %s752_s8 = scalar_lea.hbm %s1122_s3, 512 }
 0x169   : > { %p749_p0 = scmp.ne.s32.totalorder %s1070_s10, %s748_s27  ;;  %p753_p6 = scmp.lt.u32.totalorder %s1070_s10, %s1122_s3 }
 0x16a   : > { %p754_p7 = scmp.lt.u32.totalorder %s752_s8, %s748_s27  ;;  %p756_p8 = scmp.lt.u32.totalorder %s748_s27, %s1070_s10 }
 0x16b   : > { %p750_p4 = pnand %p749_p0, %p1137_p12 }
 0x16c   : > { %p755_p2 = por %p754_p7, %p753_p6 }
 0x16d   : > { %p751_p13 = pneg %p750_p4 }
 0x16e   : > { %p757_p1 = por %p756_p8, %p755_p2 }
 0x170   : > { %p758_p10 = pnand %p757_p1, %p751_p13 }
 0x172   : > { %761 = shalt.err (!%p758_p10)
}
 0x173   : > { %s832_s22 = smov 128   ;;  %s833_s11 = smov 8  }
 0x174   : > { %558 = dma.vmem_to_hbm [thread:$0]  (%p1137_p12), %s1065_s24, 256, %s1070_s10, %s366_s15, %s832_s22, %s832_s22, %s833_s11  }
 0x175 PF: > { %s396_s18 = sand.u32 1, %s800_s12   ;;  %p1138_p3 = scmp.ne.s32.totalorder %s1130_s23, 0 }
 0x176   : > { %p1139_p5 = scmp.ge.s32.totalorder %s820_s17, 2  ;;  %s397_s9 = scalar_lea.sflag [#allocation4], %s396_s18 }
 0x178   : > { %p572_p9 = pnand %p1139_p5, %p1138_p3 }
 0x17a   : > { %795 = dma.done.wait (!%p572_p9), %s397_s9, 256  }
 0x17b   : > { %797 = vsyncadd (!%p572_p9), %s397_s9, 4294967040  ;;  %s20_s17 = sadd.s32 1, %s820_s17   ;;  %s1140_s12 = smov %s804_s13 }
 0x17c   : > { %p17_p11 = scmp.ge.s32.totalorder %s20_s17, 4   ;;  %s1141_s13 = smov %s808_s14 }
 0x17d   : > { %s1142_s14 = smov %s999_s7  ;;  %s1143_s15 = smov %s816_s16 }
 0x17e   : > { %s1144_s16 = smov %s1146_s28  ;;  %19 = sbr.rel (!%p17_p11) target bundleno = 7 (0x7), region = 86 }
 0x185   :  { %402 = vsyncpa [#allocation3], 1 }
 0x186   :  { %404 = vsyncpa [#allocation3 + $0x1], 1 }
 0x187   :  { %405 = vsyncpa [#allocation6], 1 }
 0x188   :  { %406 = vsyncpa [#allocation4], 1 }
 0x189   :  { %408 = vsyncpa [#allocation4 + $0x1], 1 }

</bundles_post_ra>
